<compile_context>
chip_gen: v7x
topology: tpu7x:2x2x1
jax: 0.10.0
libtpu: 0.0.40
codegen_flags: <defaults>
</compile_context>

<pallas_src>
import functools

import jax
import jax.numpy as jnp
from jax import lax
from jax.experimental import pallas as pl
from jax.experimental.pallas import tpu as pltpu

_EPS = 1e-8  # matches torch.nn.functional.cosine_similarity default eps


def _cosine_loss_kernel(x1_ref, x2_ref, out_ref, w1_ref, *, inv_l):
    """Accumulating cosine-loss kernel.

    x1_ref : (N, TD)  VMEM tile of input1 (same block for every l step)
    x2_ref : (N, TD)  VMEM tile of input2[l] (leading L dim squeezed)
    out_ref: (1, TD)  resident f32 accumulator (same block across the l axis)
    w1_ref : (1, TD)  f32 scratch holding sum(x1*x1, axis=0) (loop-invariant)
    inv_l  : static Python float, 1.0 / L
    """
    l = pl.program_id(1)
    num_l = pl.num_programs(1)

    x1 = x1_ref[...].astype(jnp.float32)   # (N, TD)
    x2 = x2_ref[...].astype(jnp.float32)   # (N, TD)

    @pl.when(l == 0)
    def _():
        # Hoisted loop-invariant ||x1||^2 and accumulator init.
        w1_ref[...] = jnp.sum(x1 * x1, axis=0, keepdims=True)
        out_ref[...] = jnp.zeros_like(out_ref)

    # Reductions over the N (dim=0) axis, per lane-column d.
    w12 = jnp.sum(x1 * x2, axis=0, keepdims=True)   # (1, TD)
    w2 = jnp.sum(x2 * x2, axis=0, keepdims=True)    # (1, TD)

    # 1 - w12 / sqrt(max(w1*w2, eps^2))  ==  1 - w12 * rsqrt(...)
    denom_sq = jnp.maximum(w1_ref[...] * w2, jnp.float32(_EPS * _EPS))
    loss = 1.0 - w12 * lax.rsqrt(denom_sq)          # (1, TD)

    out_ref[...] += loss

    @pl.when(l == num_l - 1)
    def _():
        out_ref[...] = out_ref[...] * jnp.float32(inv_l)


def _pick_lane_tile(n, d, itemsize):
    """Largest multiple-of-128 divisor of d (<= 2048) whose double-buffered
    x1 + x2 tiles fit a conservative ~12 MiB budget (safe for the default
    scoped-VMEM limit on v5e/v6e/v7x).  Falls back to the full D extent
    (always layout-legal) when D is not a multiple of 128."""
    if d % 128 != 0:
        return d
    budget_bytes = 12 * 1024 * 1024
    # ~4 tiles of (N, TD) live at once (x1 + double-buffered x2 + headroom).
    max_td = max(128, budget_bytes // max(1, 4 * n * itemsize))
    td = 128
    for cand in range(128, min(d, 2048) + 1, 128):
        if d % cand == 0 and cand <= max_td:
            td = cand
    return td


@jax.jit
def _cosine_loss_pallas(x1, x2_stacked):
    """x1: (N, D), x2_stacked: (L, N, D) -> (D,) float32."""
    L, N, D = x2_stacked.shape
    TD = _pick_lane_tile(N, D, jnp.dtype(x1.dtype).itemsize)
    kernel = functools.partial(_cosine_loss_kernel, inv_l=1.0 / float(L))

    out = pl.pallas_call(
        kernel,
        out_shape=jax.ShapeDtypeStruct((1, D), jnp.float32),
        grid_spec=pltpu.PrefetchScalarGridSpec(
            num_scalar_prefetch=0,
            grid=(D // TD, L),
            in_specs=[
                # input1: same block for every l -> stays resident per d-tile.
                pl.BlockSpec((N, TD), lambda d, l: (0, d)),
                # input2[l]: leading L dim squeezed -> kernel sees (N, TD).
                pl.BlockSpec((pl.Squeezed(), N, TD), lambda d, l: (l, 0, d)),
            ],
            # Resident accumulator: same block across the (last, arbitrary) l.
            out_specs=pl.BlockSpec((1, TD), lambda d, l: (0, d)),
            scratch_shapes=[pltpu.VMEM((1, TD), jnp.float32)],
        ),
        compiler_params=pltpu.CompilerParams(
            dimension_semantics=("parallel", "arbitrary"),
        ),
    )(x1, x2_stacked)
    return out[0]  # (D,)


def _as_2d(v):
    """Mirror the PyTorch list-branch preprocessing: torch.stack(i).squeeze(1)."""
    if isinstance(v, (list, tuple)):
        arr = jnp.stack([jnp.asarray(e) for e in v], axis=0)
        if arr.ndim > 2 and arr.shape[1] == 1:
            arr = jnp.squeeze(arr, axis=1)
        return arr
    return jnp.asarray(v)


def cosine_loss(input1, input2):
    """JAX/Pallas equivalent of CosineLoss.forward.

    input1: (N, D) array.
    input2: (N, D) array, or a list whose elements are (N, D) arrays (or lists
            of (1, D) arrays, matching the torch.stack(i).squeeze(1) branch).
    Returns: (D,) float32 loss vector.
    """
    x1 = jnp.asarray(input1)  # keep native dtype (bf16 stays bf16 in HBM)
    if isinstance(input2, (list, tuple)):
        x2 = jnp.stack([_as_2d(v) for v in input2], axis=0)   # (L, N, D)
    else:
        x2 = jnp.asarray(input2)[None]                         # L = 1
    x2 = x2.astype(x1.dtype)
    return _cosine_loss_pallas(x1, x2)


def _cosine_loss_ref(x1, x2_list):
    """Pure-JAX reference for validation (f32 math on the given inputs)."""
    x1 = jnp.asarray(x1).astype(jnp.float32)
    if not isinstance(x2_list, (list, tuple)):
        x2_list = [x2_list]
    total = 0.0
    for x2 in x2_list:
        x2 = _as_2d(x2).astype(jnp.float32)
        w12 = jnp.sum(x1 * x2, axis=0)
        w1 = jnp.sum(x1 * x1, axis=0)
        w2 = jnp.sum(x2 * x2, axis=0)
        cos = w12 / jnp.sqrt(jnp.maximum(w1 * w2, _EPS * _EPS))
        total = total + (1.0 - cos)
    return total / len(x2_list)


if __name__ == "__main__":
    key = jax.random.PRNGKey(0)
    N, D = 8, 128
    k1, k2, k3, k4 = jax.random.split(key, 4)

    input1 = jax.random.normal(k1, (N, D), dtype=jnp.float32)

    # Pair (tensor, tensor) branch.
    input2_single = jax.random.normal(k2, (N, D), dtype=jnp.float32)
    out_single = jax.block_until_ready(cosine_loss(input1, input2_single))
    ref_single = _cosine_loss_ref(input1, input2_single)
    assert out_single.shape == (D,)
    assert jnp.allclose(out_single, ref_single, atol=1e-5, rtol=1e-5)

    # List branch (averaged over list elements).
    input2_list = [
        jax.random.normal(k3, (N, D), dtype=jnp.float32),
        jax.random.normal(k4, (N, D), dtype=jnp.float32),
        input2_single,
    ]
    out_list = jax.block_until_ready(cosine_loss(input1, input2_list))
    ref_list = _cosine_loss_ref(input1, input2_list)
    assert out_list.shape == (D,)
    assert jnp.allclose(out_list, ref_list, atol=1e-5, rtol=1e-5)

    # bf16 streaming path (inputs kept bf16 in HBM, f32 accumulation in-kernel).
    x1_bf16 = input1.astype(jnp.bfloat16)
    x2_bf16 = [v.astype(jnp.bfloat16) for v in input2_list]
    out_bf16 = jax.block_until_ready(cosine_loss(x1_bf16, x2_bf16))
    ref_bf16 = _cosine_loss_ref(x1_bf16, x2_bf16)
    assert out_bf16.shape == (D,)
    assert jnp.allclose(out_bf16, ref_bf16, atol=1e-4, rtol=1e-4)

    print("KERNEL_OK")
</pallas_src>

<mosaic_0001>
module attributes {stable_mosaic.version = 11 : i64} {
  func.func @_cosine_loss_kernel(%arg0: i32, %arg1: i32, %arg2: memref<8x128xf32, #tpu.memory_space<vmem>>, %arg3: memref<1x8x128xf32, #tpu.memory_space<vmem>>, %arg4: memref<1x128xf32, #tpu.memory_space<vmem>>, %arg5: memref<1x128xf32, #tpu.memory_space<vmem>>) attributes {dimension_semantics = [#tpu.dimension_semantics<parallel>, #tpu.dimension_semantics<arbitrary>], iteration_bounds = array<i64: 1, 1>, scalar_prefetch = 0 : i64, scratch_operands = 1 : i64, tpu.core_type = #tpu.core_type<tc>, window_params = [{transform_indices = @transform_0, window_bounds = array<i64: 8, 128>}, {transform_indices = @transform_1, window_bounds = array<i64: 1, 8, 128>}, {transform_indices = @transform_2, window_bounds = array<i64: 1, 128>}]} {
    %c0 = arith.constant 0 : index
    %c0_0 = arith.constant 0 : index
    %0 = vector.load %arg2[%c0, %c0_0] : memref<8x128xf32, #tpu.memory_space<vmem>>, vector<8x128xf32>
    %c0_1 = arith.constant 0 : index
    %c0_2 = arith.constant 0 : index
    %c0_3 = arith.constant 0 : index
    %1 = vector.load %arg3[%c0_1, %c0_2, %c0_3] : memref<1x8x128xf32, #tpu.memory_space<vmem>>, vector<1x8x128xf32>
    %2 = vector.shape_cast %1 : vector<1x8x128xf32> to vector<8x128xf32>
    %c0_i32 = arith.constant 0 : i32
    %3 = arith.cmpi eq, %arg1, %c0_i32 : i32
    %4 = arith.extui %3 : i1 to i32
    %c0_i32_4 = arith.constant 0 : i32
    %5 = arith.cmpi ne, %4, %c0_i32_4 : i32
    scf.if %5 {
      %26 = arith.mulf %0, %0 : vector<8x128xf32>
      %cst_16 = arith.constant dense<0.000000e+00> : vector<128xf32>
      %27 = vector.multi_reduction <add>, %26, %cst_16 [0] : vector<8x128xf32> to vector<128xf32>
      %28 = vector.shape_cast %27 : vector<128xf32> to vector<1x128xf32>
      %c0_17 = arith.constant 0 : index
      %c0_18 = arith.constant 0 : index
      %29 = vector.load %arg5[%c0_17, %c0_18] : memref<1x128xf32, #tpu.memory_space<vmem>>, vector<1x128xf32>
      tpu.vector_store %arg5[%c0_17, %c0_18], %28 {strides = array<i32>} : memref<1x128xf32, #tpu.memory_space<vmem>>, vector<1x128xf32>,
      %cst_19 = arith.constant 0.000000e+00 : f32
      %30 = vector.broadcast %cst_19 : f32 to vector<1x128xf32>
      %c0_20 = arith.constant 0 : index
      %c0_21 = arith.constant 0 : index
      %31 = vector.load %arg4[%c0_20, %c0_21] : memref<1x128xf32, #tpu.memory_space<vmem>>, vector<1x128xf32>
      tpu.vector_store %arg4[%c0_20, %c0_21], %30 {strides = array<i32>} : memref<1x128xf32, #tpu.memory_space<vmem>>, vector<1x128xf32>,
    } else {
    }
    %6 = arith.mulf %0, %2 : vector<8x128xf32>
    %cst = arith.constant dense<0.000000e+00> : vector<128xf32>
    %7 = vector.multi_reduction <add>, %6, %cst [0] : vector<8x128xf32> to vector<128xf32>
    %8 = vector.shape_cast %7 : vector<128xf32> to vector<1x128xf32>
    %9 = arith.mulf %2, %2 : vector<8x128xf32>
    %cst_5 = arith.constant dense<0.000000e+00> : vector<128xf32>
    %10 = vector.multi_reduction <add>, %9, %cst_5 [0] : vector<8x128xf32> to vector<128xf32>
    %11 = vector.shape_cast %10 : vector<128xf32> to vector<1x128xf32>
    %c0_6 = arith.constant 0 : index
    %c0_7 = arith.constant 0 : index
    %12 = vector.load %arg5[%c0_6, %c0_7] : memref<1x128xf32, #tpu.memory_space<vmem>>, vector<1x128xf32>
    %13 = arith.mulf %12, %11 : vector<1x128xf32>
    %cst_8 = arith.constant 1.000000e-16 : f32
    %14 = vector.broadcast %cst_8 : f32 to vector<1x128xf32>
    %15 = arith.maximumf %13, %14 : vector<1x128xf32>
    %16 = math.rsqrt %15 : vector<1x128xf32>
    %17 = arith.mulf %8, %16 : vector<1x128xf32>
    %cst_9 = arith.constant 1.000000e+00 : f32
    %18 = vector.broadcast %cst_9 : f32 to vector<1x128xf32>
    %19 = arith.subf %18, %17 : vector<1x128xf32>
    %c0_10 = arith.constant 0 : index
    %c0_11 = arith.constant 0 : index
    %20 = vector.load %arg4[%c0_10, %c0_11] : memref<1x128xf32, #tpu.memory_space<vmem>>, vector<1x128xf32>
    %21 = arith.addf %20, %19 : vector<1x128xf32>
    %c0_12 = arith.constant 0 : index
    %c0_13 = arith.constant 0 : index
    %22 = vector.load %arg4[%c0_12, %c0_13] : memref<1x128xf32, #tpu.memory_space<vmem>>, vector<1x128xf32>
    tpu.vector_store %arg4[%c0_12, %c0_13], %21 {strides = array<i32>} : memref<1x128xf32, #tpu.memory_space<vmem>>, vector<1x128xf32>,
    %c0_i32_14 = arith.constant 0 : i32
    %23 = arith.cmpi eq, %arg1, %c0_i32_14 : i32
    %24 = arith.extui %23 : i1 to i32
    %c0_i32_15 = arith.constant 0 : i32
    %25 = arith.cmpi ne, %24, %c0_i32_15 : i32
    scf.if %25 {
      %c0_16 = arith.constant 0 : index
      %c0_17 = arith.constant 0 : index
      %26 = vector.load %arg4[%c0_16, %c0_17] : memref<1x128xf32, #tpu.memory_space<vmem>>, vector<1x128xf32>
      %cst_18 = arith.constant 1.000000e+00 : f32
      %27 = vector.broadcast %cst_18 : f32 to vector<1x128xf32>
      %28 = arith.mulf %26, %27 : vector<1x128xf32>
      %c0_19 = arith.constant 0 : index
      %c0_20 = arith.constant 0 : index
      %29 = vector.load %arg4[%c0_19, %c0_20] : memref<1x128xf32, #tpu.memory_space<vmem>>, vector<1x128xf32>
      tpu.vector_store %arg4[%c0_19, %c0_20], %28 {strides = array<i32>} : memref<1x128xf32, #tpu.memory_space<vmem>>, vector<1x128xf32>,
    } else {
    }
    return
  }
  func.func @transform_0(%arg0: i32, %arg1: i32) -> (i32, i32) {
    %c0_i32 = arith.constant 0 : i32
    %c0_i32_0 = arith.constant 0 : i32
    return %c0_i32, %arg0 : i32, i32
  }
  func.func @transform_1(%arg0: i32, %arg1: i32) -> (i32, i32, i32) {
    %c0_i32 = arith.constant 0 : i32
    %c0_i32_0 = arith.constant 0 : i32
    return %arg1, %c0_i32, %arg0 : i32, i32, i32
  }
  func.func @transform_2(%arg0: i32, %arg1: i32) -> (i32, i32) {
    %c0_i32 = arith.constant 0 : i32
    %c0_i32_0 = arith.constant 0 : i32
    return %c0_i32, %arg0 : i32, i32
  }
}

</mosaic_0001>

<bundles_post_ra>
// kernel: _cosine_loss_pallas.1
= control target key start
LH: loop header
LB: loop body
LE: loop exit
PB: predicated region body
PF: predicated region fallthrough
CT: control target
= control target key end

     0   :  { %7 = vsyncpa [#allocation4], 0  ;;  %s228_s0 = inlined_call_operand.hbm [shape: f32[8,128], index: 0, kind: input, shape index: {}]   ;;  %s229_s1 = inlined_call_operand.hbm [shape: f32[1,8,128], index: 1, kind: input, shape index: {}]   ;;  %s230_s2 = inlined_call_operand.hbm [shape: f32[1,128], index: 2, kind: output, shape index: {}]  }
   0x1   :  { %8 = vsyncpa [#allocation7], 0 }
   0x2   :  { %9 = vsyncpa [#allocation5], 0  ;;  %s173_s9 = smov [#allocation3]   ;;  %s174_s11 = smov [#allocation6]  }
   0x3   :  { %s16_s10 = sshll.u32 %s173_s9, 4  ;;  %s26_s12 = sshll.u32 %s174_s11, 4  ;;  %s17_s10 = int_to_ptr.vmem [resolvable:$true] %s16_s10  ;;  %s27_s12 = int_to_ptr.vmem [resolvable:$true] %s26_s12 }
   0x4   :  { %s101_s15 = scalar_lea.hbm %s228_s0, 128 }
   0x5   :  { %p102_p0 = scmp.ne.s32.totalorder %s228_s0, %s101_s15  ;;  %p105_p1 = scmp.lt.u32.totalorder %s101_s15, %s228_s0 }
   0x7   :  { %p107_p2 = pnand %p105_p1, %p102_p0 }
   0x9   :  { %110 = shalt.err (!%p107_p2)
}
   0xa   :  { %s111_s20 = scalar_lea.vmem %s17_s10, 128  ;;  %p116_p4 = scmp.lt.s32.totalorder %s17_s10, %s17_s10 }
   0xb   :  { %p112_p3 = scmp.ne.s32.totalorder %s17_s10, %s111_s20  ;;  %p117_p5 = scmp.lt.s32.totalorder %s111_s20, %s111_s20 }
   0xd   :  { %p118_p6 = por %p117_p5, %p116_p4 }
   0xf   :  { %p119_p7 = pnand %p118_p6, %p112_p3 }
  0x11   :  { %122 = shalt.err (!%p119_p7)
}
  0x12   :  { %19 = dma.hbm_to_vmem [thread:$0]  %s228_s0, 128, %s17_s10, [#allocation4]  }
  0x13   :  { %s123_s25 = scalar_lea.hbm %s229_s1, 128 }
  0x14   :  { %p124_p8 = scmp.ne.s32.totalorder %s229_s1, %s123_s25  ;;  %p127_p9 = scmp.lt.u32.totalorder %s123_s25, %s229_s1 }
  0x16   :  { %p129_p10 = pnand %p127_p9, %p124_p8 }
  0x18   :  { %132 = shalt.err (!%p129_p10)
}
  0x19   :  { %s133_s30 = scalar_lea.vmem %s27_s12, 128  ;;  %p138_p12 = scmp.lt.s32.totalorder %s27_s12, %s27_s12 }
  0x1a   :  { %p134_p11 = scmp.ne.s32.totalorder %s27_s12, %s133_s30  ;;  %p139_p13 = scmp.lt.s32.totalorder %s133_s30, %s133_s30 }
  0x1c   :  { %p140_p0 = por %p139_p13, %p138_p12 }
  0x1e   :  { %p141_p1 = pnand %p140_p0, %p134_p11 }
  0x20   :  { %144 = shalt.err (!%p141_p1)
}
  0x21   :  { %29 = dma.hbm_to_vmem [thread:$0]  %s229_s1, 128, %s27_s12, [#allocation7]  }
  0x22   :  { %167 = dma.done.wait [#allocation4], 128  }
  0x23   :  { %168 = vsyncadd [#allocation4], 4294967168 }
  0x24   :  { %169 = dma.done.wait [#allocation7], 128  }
  0x25   :  { %170 = vsyncadd [#allocation7], 4294967168  ;;  %v175_v0 = vmov 0.0   ;;  %v36_v1 = vld [vmem:[#allocation3] sm:$0xff]  ;;  %v37_v2 = vld [vmem:[#allocation6] sm:$0xff]  ;;  %s176_s1 = smov [#allocation8]  }
  0x26   :  { %50 = vst [vmem:[#allocation8] sm:$0x1] %v175_v0  ;;  %v42_v3 = vmul.f32 %v36_v1, %v36_v1  ;;  %v58_v4 = vmul.f32 %v37_v2, %v37_v2  ;;  %v51_v12 = vmul.f32 %v37_v2, %v36_v1  ;;  %s85_s4 = sshll.u32 %s176_s1, 4  ;;  %s86_s4 = int_to_ptr.vmem [resolvable:$true] %s85_s4 }
  0x27   :  { %s145_s5 = scalar_lea.vmem %s86_s4, 16  ;;  %s149_s6 = scalar_lea.vmem %s86_s4, 32 }
  0x28   :  { %v43_v5 = vrot.slane %v42_v3, 4  ;;  %v59_v6 = vrot.slane %v58_v4, 4  ;;  %v52_v16 = vrot.slane %v51_v12, 4  ;;  %p146_p2 = scmp.ne.s32.totalorder %s86_s4, %s145_s5  ;;  %p150_p3 = scmp.lt.s32.totalorder %s86_s4, %s86_s4 }
  0x29   :  { %p151_p4 = scmp.lt.s32.totalorder %s149_s6, %s145_s5 }
  0x2a   :  { %v44_v7 = vadd.f32 %v43_v5, %v42_v3  ;;  %v60_v8 = vadd.f32 %v59_v6, %v58_v4  ;;  %v53_v18 = vadd.f32 %v52_v16, %v51_v12 }
  0x2b   :  { %p152_p5 = por %p151_p4, %p150_p3 }
  0x2c   :  { %v45_v9 = vrot.slane %v44_v7, 2  ;;  %v61_v10 = vrot.slane %v60_v8, 2  ;;  %v54_v20 = vrot.slane %v53_v18, 2 }
  0x2d   :  { %v71_v29 = vld [vmem:[#allocation8] sm:$0x1]  ;;  %p153_p6 = pnand %p152_p5, %p146_p2 }
  0x2e   :  { %v46_v11 = vadd.f32 %v45_v9, %v44_v7  ;;  %v62_v14 = vadd.f32 %v61_v10, %v60_v8  ;;  %v55_v24 = vadd.f32 %v54_v20, %v53_v18 }
  0x30   :  { %v47_v13 = vrot.slane %v46_v11, 1  ;;  %v63_v17 = vrot.slane %v62_v14, 1  ;;  %v56_v25 = vrot.slane %v55_v24, 1 }
  0x32   :  { %v48_v15 = vadd.f32 %v47_v13, %v46_v11  ;;  %v64_v19 = vadd.f32 %v63_v17, %v62_v14  ;;  %v57_v26 = vadd.f32 %v56_v25, %v55_v24 }
  0x34   :  { %49 = vst [vmem:[#allocation2] sm:$0x1] %v48_v15 }
  0x3b   :  { %v65_v21 = vld [vmem:[#allocation2] sm:$0x1] }
  0x3c   :  { %v66_v22 = vmul.f32 %v65_v21, %v64_v19 }
  0x3e   :  { %v67_v23 = vmax.f32 %v66_v22, 1e-16 }
  0x40   :  { %99 = vrsqrt.f32 %v67_v23 }
  0x4a   :  { %v100_v27 = vpop.eup %99 }
  0x4b   :  { %v69_v28 = vmul.f32 %v100_v27, %v57_v26 }
  0x4d   :  { %v70_v30 = vsub.f32 1.0, %v69_v28 }
  0x4f   :  { %v72_v31 = vadd.f32 %v71_v29, %v70_v30 }
  0x51   :  { %73 = vst [vmem:[#allocation8] sm:$0x1] %v72_v31 }
  0x58   :  { %v77_v32 = vld [vmem:[#allocation8] sm:$0x1] }
  0x59   :  { %78 = vst [vmem:[#allocation8] sm:$0x1] %v77_v32 }
  0x5a   :  { %156 = shalt.err (!%p153_p6)
}
  0x5b   :  { %s157_s9 = scalar_lea.hbm %s230_s2, 16 }
  0x5c   :  { %p158_p7 = scmp.ne.s32.totalorder %s230_s2, %s157_s9  ;;  %p161_p8 = scmp.lt.u32.totalorder %s157_s9, %s230_s2 }
  0x5e   :  { %p163_p9 = pnand %p161_p8, %p158_p7 }
  0x60   :  { %166 = shalt.err (!%p163_p9)
}
  0x61   :  { %88 = dma.vmem_to_hbm [thread:$0]  %s86_s4, 16, %s230_s2, [#allocation5]  }
  0x62   :  { %171 = dma.done.wait [#allocation5], 16  }
  0x63   :  { %172 = vsyncadd [#allocation5], 4294967280 }
  0x64   :  { %92 = vsyncpa [#allocation4], 1 }
  0x65   :  { %93 = vsyncpa [#allocation7], 1 }
  0x66   :  { %94 = vsyncpa [#allocation5], 1 }

</bundles_post_ra>
